<compile_context>
chip_gen: v7x
topology: tpu7x:2x2x1
jax: 0.10.0
libtpu: 0.0.40
codegen_flags: <defaults>
</compile_context>

<pallas_src>
import functools

import jax
import jax.numpy as jnp
from jax import lax
from jax.experimental import pallas as pl
from jax.experimental.pallas import tpu as pltpu


# ----------------------------- Pallas kernel ------------------------------ #

def _glstm_kernel(x_ref, wx1_ref, wh1_ref, b1_ref, wx2_ref, wh2_ref, b2_ref,
                  g2_ref, bt2_ref, out_ref,
                  h1_ref, c1_ref, h2_ref, c2_ref, *, H, eps):
    t = pl.program_id(1)

    @pl.when(t == 0)
    def _():
        h1_ref[...] = jnp.zeros_like(h1_ref)
        c1_ref[...] = jnp.zeros_like(c1_ref)
        h2_ref[...] = jnp.zeros_like(h2_ref)
        c2_ref[...] = jnp.zeros_like(c2_ref)

    x_t = x_ref[...].astype(jnp.float32)           # (NB, H)

    def lstm_cell(x_in, h_ref, c_ref, wx_ref, wh_ref, b_ref):
        # Single fused gate computation: bias-initialized accumulator + 2 MXU dots.
        gates = (b_ref[...]
                 + jnp.dot(x_in, wx_ref[...], preferred_element_type=jnp.float32)
                 + jnp.dot(h_ref[...], wh_ref[...], preferred_element_type=jnp.float32))
        i = jax.nn.sigmoid(gates[:, 0 * H:1 * H])
        f = jax.nn.sigmoid(gates[:, 1 * H:2 * H])
        g = jnp.tanh(gates[:, 2 * H:3 * H])
        o = jax.nn.sigmoid(gates[:, 3 * H:4 * H])
        c = f * c_ref[...] + i * g
        h = o * jnp.tanh(c)
        c_ref[...] = c
        h_ref[...] = h
        return h

    # grouped LSTM layer 1 (group structure is in the block-diagonal weights)
    h1 = lstm_cell(x_t, h1_ref, c1_ref, wx1_ref, wh1_ref, b1_ref)

    # LayerNorm1: mean/var are invariant to the group interleave; the affine
    # (gamma1/beta1) and the interleave permutation were folded into wx2/b2.
    mu1 = jnp.mean(h1, axis=-1, keepdims=True)
    d1 = h1 - mu1
    var1 = jnp.mean(d1 * d1, axis=-1, keepdims=True)
    z = d1 * lax.rsqrt(var1 + eps)

    # grouped LSTM layer 2
    h2 = lstm_cell(z, h2_ref, c2_ref, wx2_ref, wh2_ref, b2_ref)

    # LayerNorm2 (full affine, output order is plain group concat)
    mu2 = jnp.mean(h2, axis=-1, keepdims=True)
    d2 = h2 - mu2
    var2 = jnp.mean(d2 * d2, axis=-1, keepdims=True)
    y = d2 * lax.rsqrt(var2 + eps)
    out_ref[...] = (g2_ref[...] * y + bt2_ref[...]).astype(out_ref.dtype)


# --------------------------- host-side weight prep ------------------------- #

def _build_grouped_layer(layer_params, Ht, G):
    """Build block-diagonal, gate-major fused weights for one grouped LSTM layer.

    layer_params: list over groups of (w_ih (4Ht,Ht), w_hh (4Ht,Ht), b_ih, b_hh)
    Returns Wx (H, 4H), Wh (H, 4H), b (4H,) with column layout
    [i(all groups) | f(all groups) | g(all groups) | o(all groups)], each group
    occupying its contiguous Ht slice, so gate nonlinearities are uniform
    (NB, H) slices in the kernel and no per-group loop is needed.
    """
    H = Ht * G
    Wx = jnp.zeros((H, 4 * H), jnp.float32)
    Wh = jnp.zeros((H, 4 * H), jnp.float32)
    b = jnp.zeros((4 * H,), jnp.float32)
    for g, (w_ih, w_hh, b_ih, b_hh) in enumerate(layer_params):
        rows = slice(g * Ht, (g + 1) * Ht)
        for q in range(4):  # PyTorch gate order: i, f, g, o
            cols = slice(q * H + g * Ht, q * H + (g + 1) * Ht)
            Wx = Wx.at[rows, cols].set(w_ih[q * Ht:(q + 1) * Ht, :].T)
            Wh = Wh.at[rows, cols].set(w_hh[q * Ht:(q + 1) * Ht, :].T)
            b = b.at[cols].set(b_ih[q * Ht:(q + 1) * Ht] + b_hh[q * Ht:(q + 1) * Ht])
    return Wx, Wh, b


def glstm_forward(x, params, *, groups, eps=1e-5):
    """x: (B, C, T, F) NCHW-style input; hidden_size = C*F (must divide by groups)."""
    B, C, T, F = x.shape
    H = C * F
    G = groups
    Ht = H // G
    assert Ht * G == H

    # (B, C, T, F) -> time-major (T, B, H); hidden on the lane axis.
    xseq = jnp.transpose(x, (2, 0, 1, 3)).reshape(T, B, H)

    Wx1, Wh1, b1 = _build_grouped_layer(params["l1"], Ht, G)
    Wx2_blk, Wh2, b2_blk = _build_grouped_layer(params["l2"], Ht, G)
    gamma1, beta1 = params["ln1"]
    gamma2, beta2 = params["ln2"]

    # Fold LayerNorm1's affine + the stack/flatten interleave permutation into
    # the layer-2 input weights and bias:
    #   y1[..., k] = h1_cat[..., perm[k]],  perm[k] = (k % G)*Ht + k//G
    #   ln1(y1) @ Wx2_blk == z @ Wx2_eff + beta1 @ Wx2_blk,  z = (h1_cat - mu)/sd
    invperm = (jnp.arange(H) % Ht) * G + (jnp.arange(H) // Ht)
    b2 = b2_blk + beta1 @ Wx2_blk
    Wx2 = (gamma1[:, None] * Wx2_blk)[invperm, :]

    NB = B if B <= 8 else 8                       # batch tile (sublane axis)
    n_bblk = pl.cdiv(B, NB)
    grid = (n_bblk, T)

    steps = n_bblk * T
    cost = pl.CostEstimate(
        flops=int(4 * 2 * NB * H * 4 * H) * steps,          # 4 (NB,H)@(H,4H) dots/step
        transcendentals=int(10 * NB * H) * steps,           # sigmoid/tanh per step
        bytes_accessed=int(2 * T * B * H * 4
                           + 4 * (H * 4 * H) * 4 + 2 * 4 * H * 4 + 2 * H * 4),
    )

    out_seq = pl.pallas_call(
        functools.partial(_glstm_kernel, H=H, eps=eps),
        out_shape=jax.ShapeDtypeStruct((T, B, H), x.dtype),
        grid=grid,
        in_specs=[
            pl.BlockSpec((None, NB, H), lambda bb, t: (t, bb, 0)),     # x_t
            pl.BlockSpec((H, 4 * H), lambda bb, t: (0, 0)),            # Wx1 (resident)
            pl.BlockSpec((H, 4 * H), lambda bb, t: (0, 0)),            # Wh1
            pl.BlockSpec((1, 4 * H), lambda bb, t: (0, 0)),            # b1
            pl.BlockSpec((H, 4 * H), lambda bb, t: (0, 0)),            # Wx2 (folded)
            pl.BlockSpec((H, 4 * H), lambda bb, t: (0, 0)),            # Wh2
            pl.BlockSpec((1, 4 * H), lambda bb, t: (0, 0)),            # b2 (folded)
            pl.BlockSpec((1, H), lambda bb, t: (0, 0)),                # gamma2
            pl.BlockSpec((1, H), lambda bb, t: (0, 0)),                # beta2
        ],
        out_specs=pl.BlockSpec((None, NB, H), lambda bb, t: (t, bb, 0)),
        scratch_shapes=[pltpu.VMEM((NB, H), jnp.float32)] * 4,         # h1,c1,h2,c2
        compiler_params=pltpu.CompilerParams(
            dimension_semantics=("parallel", "arbitrary")),
        cost_estimate=cost,
    )(xseq, Wx1, Wh1, b1.reshape(1, 4 * H), Wx2, Wh2, b2.reshape(1, 4 * H),
      gamma2.reshape(1, H), beta2.reshape(1, H))

    # (T, B, H) -> (B, C, T, F)
    return jnp.transpose(out_seq.reshape(T, B, C, F), (1, 2, 0, 3))


# ------------------------------ pure-JAX reference ------------------------- #

def _lstm_ref(x_seq, w_ih, w_hh, b_ih, b_hh):
    """Single-layer batch_first LSTM (zero init), PyTorch gate order i,f,g,o."""
    Bn = x_seq.shape[0]
    Hh = w_hh.shape[1]

    def step(carry, x_t):
        h, c = carry
        gates = x_t @ w_ih.T + h @ w_hh.T + b_ih + b_hh
        i, f, g, o = jnp.split(gates, 4, axis=-1)
        i, f, o = jax.nn.sigmoid(i), jax.nn.sigmoid(f), jax.nn.sigmoid(o)
        g = jnp.tanh(g)
        c = f * c + i * g
        h = o * jnp.tanh(c)
        return (h, c), h

    init = (jnp.zeros((Bn, Hh), jnp.float32), jnp.zeros((Bn, Hh), jnp.float32))
    _, hs = lax.scan(step, init, jnp.swapaxes(x_seq, 0, 1))
    return jnp.swapaxes(hs, 0, 1)


def _layernorm_ref(x, gamma, beta, eps=1e-5):
    mu = jnp.mean(x, axis=-1, keepdims=True)
    var = jnp.mean((x - mu) ** 2, axis=-1, keepdims=True)
    return gamma * (x - mu) / jnp.sqrt(var + eps) + beta


def _glstm_reference(x, params, *, groups, eps=1e-5):
    B, C, T, F = x.shape
    H = C * F
    out = jnp.transpose(x, (0, 2, 1, 3)).reshape(B, T, H)
    chunks = jnp.split(out, groups, axis=-1)
    h1 = [_lstm_ref(chunks[g], *params["l1"][g]) for g in range(groups)]
    y1 = jnp.stack(h1, axis=-1).reshape(B, T, H)          # stack(dim=-1)+flatten
    y1 = _layernorm_ref(y1, *params["ln1"], eps=eps)
    chunks2 = jnp.split(y1, groups, axis=-1)
    h2 = [_lstm_ref(chunks2[g], *params["l2"][g]) for g in range(groups)]
    y2 = jnp.concatenate(h2, axis=-1)
    y2 = _layernorm_ref(y2, *params["ln2"], eps=eps)
    return jnp.transpose(y2.reshape(B, T, C, F), (0, 2, 1, 3))


# ------------------------------------ test --------------------------------- #

if __name__ == "__main__":
    key = jax.random.PRNGKey(0)
    B, C, T, F = 2, 4, 8, 8        # hidden_size = C*F = 32
    groups = 2
    H = C * F
    Ht = H // groups

    keys = list(jax.random.split(key, 32))
    ki = iter(keys)
    x = jax.random.normal(next(ki), (B, C, T, F), jnp.float32)

    def lstm_params():
        s = float(1.0 / (Ht ** 0.5))    # PyTorch-like uniform(-1/sqrt(H), 1/sqrt(H))
        w_ih = jax.random.uniform(next(ki), (4 * Ht, Ht), jnp.float32, -s, s)
        w_hh = jax.random.uniform(next(ki), (4 * Ht, Ht), jnp.float32, -s, s)
        b_ih = jax.random.uniform(next(ki), (4 * Ht,), jnp.float32, -s, s)
        b_hh = jax.random.uniform(next(ki), (4 * Ht,), jnp.float32, -s, s)
        return (w_ih, w_hh, b_ih, b_hh)

    l1 = [lstm_params() for _ in range(groups)]
    l2 = [lstm_params() for _ in range(groups)]
    # non-trivial LayerNorm affines to exercise the host-side folding
    gamma1 = 1.0 + 0.1 * jax.random.normal(next(ki), (H,), jnp.float32)
    beta1 = 0.1 * jax.random.normal(next(ki), (H,), jnp.float32)
    gamma2 = 1.0 + 0.1 * jax.random.normal(next(ki), (H,), jnp.float32)
    beta2 = 0.1 * jax.random.normal(next(ki), (H,), jnp.float32)

    params = {"l1": l1, "l2": l2, "ln1": (gamma1, beta1), "ln2": (gamma2, beta2)}

    out = glstm_forward(x, params, groups=groups)
    out = jax.block_until_ready(out)

    ref = _glstm_reference(x, params, groups=groups)
    assert out.shape == ref.shape == (B, C, T, F), (out.shape, ref.shape)
    max_err = float(jnp.max(jnp.abs(out - ref)))
    assert jnp.allclose(out, ref, atol=2e-3, rtol=2e-3), max_err
    print("KERNEL_OK")
</pallas_src>

<mosaic_0001>
module attributes {stable_mosaic.version = 11 : i64} {
  func.func @_glstm_kernel(%arg0: i32, %arg1: i32, %arg2: memref<1x2x32xf32, #tpu.memory_space<vmem>>, %arg3: memref<32x128xf32, #tpu.memory_space<vmem>>, %arg4: memref<32x128xf32, #tpu.memory_space<vmem>>, %arg5: memref<1x128xf32, #tpu.memory_space<vmem>>, %arg6: memref<32x128xf32, #tpu.memory_space<vmem>>, %arg7: memref<32x128xf32, #tpu.memory_space<vmem>>, %arg8: memref<1x128xf32, #tpu.memory_space<vmem>>, %arg9: memref<1x32xf32, #tpu.memory_space<vmem>>, %arg10: memref<1x32xf32, #tpu.memory_space<vmem>>, %arg11: memref<1x2x32xf32, #tpu.memory_space<vmem>>, %arg12: memref<2x32xf32, #tpu.memory_space<vmem>>, %arg13: memref<2x32xf32, #tpu.memory_space<vmem>>, %arg14: memref<2x32xf32, #tpu.memory_space<vmem>>, %arg15: memref<2x32xf32, #tpu.memory_space<vmem>>) attributes {dimension_semantics = [#tpu.dimension_semantics<parallel>, #tpu.dimension_semantics<arbitrary>], iteration_bounds = array<i64: 1, 8>, scalar_prefetch = 0 : i64, scratch_operands = 4 : i64, tpu.core_type = #tpu.core_type<tc>, window_params = [{transform_indices = @transform_0, window_bounds = array<i64: 1, 2, 32>}, {pipeline_mode = #tpu.pipeline_mode<synchronous>, transform_indices = @transform_1, window_bounds = array<i64: 32, 128>}, {pipeline_mode = #tpu.pipeline_mode<synchronous>, transform_indices = @transform_2, window_bounds = array<i64: 32, 128>}, {pipeline_mode = #tpu.pipeline_mode<synchronous>, transform_indices = @transform_3, window_bounds = array<i64: 1, 128>}, {pipeline_mode = #tpu.pipeline_mode<synchronous>, transform_indices = @transform_4, window_bounds = array<i64: 32, 128>}, {pipeline_mode = #tpu.pipeline_mode<synchronous>, transform_indices = @transform_5, window_bounds = array<i64: 32, 128>}, {pipeline_mode = #tpu.pipeline_mode<synchronous>, transform_indices = @transform_6, window_bounds = array<i64: 1, 128>}, {pipeline_mode = #tpu.pipeline_mode<synchronous>, transform_indices = @transform_7, window_bounds = array<i64: 1, 32>}, {pipeline_mode = #tpu.pipeline_mode<synchronous>, transform_indices = @transform_8, window_bounds = array<i64: 1, 32>}, {transform_indices = @transform_9, window_bounds = array<i64: 1, 2, 32>}]} {
    %c0_i32 = arith.constant 0 : i32
    %0 = arith.cmpi eq, %arg1, %c0_i32 : i32
    %1 = arith.extui %0 : i1 to i32
    %c0_i32_0 = arith.constant 0 : i32
    %2 = arith.cmpi ne, %1, %c0_i32_0 : i32
    scf.if %2 {
      %cst_57 = arith.constant 0.000000e+00 : f32
      %120 = vector.broadcast %cst_57 : f32 to vector<2x32xf32>
      %c0_58 = arith.constant 0 : index
      %c0_59 = arith.constant 0 : index
      %121 = vector.load %arg12[%c0_58, %c0_59] : memref<2x32xf32, #tpu.memory_space<vmem>>, vector<2x32xf32>
      tpu.vector_store %arg12[%c0_58, %c0_59], %120 {strides = array<i32>} : memref<2x32xf32, #tpu.memory_space<vmem>>, vector<2x32xf32>,
      %cst_60 = arith.constant 0.000000e+00 : f32
      %122 = vector.broadcast %cst_60 : f32 to vector<2x32xf32>
      %c0_61 = arith.constant 0 : index
      %c0_62 = arith.constant 0 : index
      %123 = vector.load %arg13[%c0_61, %c0_62] : memref<2x32xf32, #tpu.memory_space<vmem>>, vector<2x32xf32>
      tpu.vector_store %arg13[%c0_61, %c0_62], %122 {strides = array<i32>} : memref<2x32xf32, #tpu.memory_space<vmem>>, vector<2x32xf32>,
      %cst_63 = arith.constant 0.000000e+00 : f32
      %124 = vector.broadcast %cst_63 : f32 to vector<2x32xf32>
      %c0_64 = arith.constant 0 : index
      %c0_65 = arith.constant 0 : index
      %125 = vector.load %arg14[%c0_64, %c0_65] : memref<2x32xf32, #tpu.memory_space<vmem>>, vector<2x32xf32>
      tpu.vector_store %arg14[%c0_64, %c0_65], %124 {strides = array<i32>} : memref<2x32xf32, #tpu.memory_space<vmem>>, vector<2x32xf32>,
      %cst_66 = arith.constant 0.000000e+00 : f32
      %126 = vector.broadcast %cst_66 : f32 to vector<2x32xf32>
      %c0_67 = arith.constant 0 : index
      %c0_68 = arith.constant 0 : index
      %127 = vector.load %arg15[%c0_67, %c0_68] : memref<2x32xf32, #tpu.memory_space<vmem>>, vector<2x32xf32>
      tpu.vector_store %arg15[%c0_67, %c0_68], %126 {strides = array<i32>} : memref<2x32xf32, #tpu.memory_space<vmem>>, vector<2x32xf32>,
    } else {
    }
    %c0 = arith.constant 0 : index
    %c0_1 = arith.constant 0 : index
    %c0_2 = arith.constant 0 : index
    %3 = vector.load %arg2[%c0, %c0_1, %c0_2] : memref<1x2x32xf32, #tpu.memory_space<vmem>>, vector<1x2x32xf32>
    %4 = vector.shape_cast %3 : vector<1x2x32xf32> to vector<2x32xf32>
    %c0_3 = arith.constant 0 : index
    %c0_4 = arith.constant 0 : index
    %5 = vector.load %arg5[%c0_3, %c0_4] : memref<1x128xf32, #tpu.memory_space<vmem>>, vector<1x128xf32>
    %c0_5 = arith.constant 0 : index
    %c0_6 = arith.constant 0 : index
    %6 = vector.load %arg3[%c0_5, %c0_6] : memref<32x128xf32, #tpu.memory_space<vmem>>, vector<32x128xf32>
    %cst = arith.constant dense<0.000000e+00> : vector<2x128xf32>
    %7 = tpu.matmul %4, %6, %cst {dimension_numbers = #tpu.dot_dimension_numbers<[1], [0], [0], [1], [0, 0, 1, 1], [], []>} : vector<2x32xf32>, vector<32x128xf32>, vector<2x128xf32> -> vector<2x128xf32>
    %8 = vector.broadcast %5 : vector<1x128xf32> to vector<2x128xf32>
    %9 = arith.addf %8, %7 : vector<2x128xf32>
    %c0_7 = arith.constant 0 : index
    %c0_8 = arith.constant 0 : index
    %10 = vector.load %arg12[%c0_7, %c0_8] : memref<2x32xf32, #tpu.memory_space<vmem>>, vector<2x32xf32>
    %c0_9 = arith.constant 0 : index
    %c0_10 = arith.constant 0 : index
    %11 = vector.load %arg4[%c0_9, %c0_10] : memref<32x128xf32, #tpu.memory_space<vmem>>, vector<32x128xf32>
    %cst_11 = arith.constant dense<0.000000e+00> : vector<2x128xf32>
    %12 = tpu.matmul %10, %11, %cst_11 {dimension_numbers = #tpu.dot_dimension_numbers<[1], [0], [0], [1], [0, 0, 1, 1], [], []>} : vector<2x32xf32>, vector<32x128xf32>, vector<2x128xf32> -> vector<2x128xf32>
    %13 = arith.addf %9, %12 : vector<2x128xf32>
    %14 = vector.extract_strided_slice %13 {offsets = [0, 0], sizes = [2, 32], strides = [1, 1]} : vector<2x128xf32> to vector<2x32xf32>
    %15 = arith.negf %14 : vector<2x32xf32>
    %16 = math.exp %15 : vector<2x32xf32>
    %cst_12 = arith.constant 1.000000e+00 : f32
    %17 = vector.broadcast %cst_12 : f32 to vector<2x32xf32>
    %18 = arith.addf %17, %16 : vector<2x32xf32>
    %19 = arith.divf %17, %18 : vector<2x32xf32>
    %20 = vector.extract_strided_slice %13 {offsets = [0, 32], sizes = [2, 32], strides = [1, 1]} : vector<2x128xf32> to vector<2x32xf32>
    %21 = arith.negf %20 : vector<2x32xf32>
    %22 = math.exp %21 : vector<2x32xf32>
    %cst_13 = arith.constant 1.000000e+00 : f32
    %23 = vector.broadcast %cst_13 : f32 to vector<2x32xf32>
    %24 = arith.addf %23, %22 : vector<2x32xf32>
    %25 = arith.divf %23, %24 : vector<2x32xf32>
    %26 = vector.extract_strided_slice %13 {offsets = [0, 64], sizes = [2, 32], strides = [1, 1]} : vector<2x128xf32> to vector<2x32xf32>
    %27 = math.tanh %26 : vector<2x32xf32>
    %28 = vector.extract_strided_slice %13 {offsets = [0, 96], sizes = [2, 32], strides = [1, 1]} : vector<2x128xf32> to vector<2x32xf32>
    %29 = arith.negf %28 : vector<2x32xf32>
    %30 = math.exp %29 : vector<2x32xf32>
    %cst_14 = arith.constant 1.000000e+00 : f32
    %31 = vector.broadcast %cst_14 : f32 to vector<2x32xf32>
    %32 = arith.addf %31, %30 : vector<2x32xf32>
    %33 = arith.divf %31, %32 : vector<2x32xf32>
    %c0_15 = arith.constant 0 : index
    %c0_16 = arith.constant 0 : index
    %34 = vector.load %arg13[%c0_15, %c0_16] : memref<2x32xf32, #tpu.memory_space<vmem>>, vector<2x32xf32>
    %35 = arith.mulf %25, %34 : vector<2x32xf32>
    %36 = arith.mulf %19, %27 : vector<2x32xf32>
    %37 = arith.addf %35, %36 : vector<2x32xf32>
    %38 = math.tanh %37 : vector<2x32xf32>
    %39 = arith.mulf %33, %38 : vector<2x32xf32>
    %c0_17 = arith.constant 0 : index
    %c0_18 = arith.constant 0 : index
    %40 = vector.load %arg13[%c0_17, %c0_18] : memref<2x32xf32, #tpu.memory_space<vmem>>, vector<2x32xf32>
    tpu.vector_store %arg13[%c0_17, %c0_18], %37 {strides = array<i32>} : memref<2x32xf32, #tpu.memory_space<vmem>>, vector<2x32xf32>,
    %c0_19 = arith.constant 0 : index
    %c0_20 = arith.constant 0 : index
    %41 = vector.load %arg12[%c0_19, %c0_20] : memref<2x32xf32, #tpu.memory_space<vmem>>, vector<2x32xf32>
    tpu.vector_store %arg12[%c0_19, %c0_20], %39 {strides = array<i32>} : memref<2x32xf32, #tpu.memory_space<vmem>>, vector<2x32xf32>,
    %cst_21 = arith.constant dense<0.000000e+00> : vector<2xf32>
    %42 = vector.multi_reduction <add>, %39, %cst_21 [1] : vector<2x32xf32> to vector<2xf32>
    %43 = vector.shape_cast %42 : vector<2xf32> to vector<2x1xf32>
    %cst_22 = arith.constant 3.200000e+01 : f32
    %44 = vector.broadcast %cst_22 : f32 to vector<2x1xf32>
    %45 = arith.divf %43, %44 : vector<2x1xf32>
    %46 = vector.broadcast %45 : vector<2x1xf32> to vector<2x32xf32>
    %47 = arith.subf %39, %46 : vector<2x32xf32>
    %48 = arith.mulf %47, %47 : vector<2x32xf32>
    %cst_23 = arith.constant dense<0.000000e+00> : vector<2xf32>
    %49 = vector.multi_reduction <add>, %48, %cst_23 [1] : vector<2x32xf32> to vector<2xf32>
    %50 = vector.shape_cast %49 : vector<2xf32> to vector<2x1xf32>
    %cst_24 = arith.constant 3.200000e+01 : f32
    %51 = vector.broadcast %cst_24 : f32 to vector<2x1xf32>
    %52 = arith.divf %50, %51 : vector<2x1xf32>
    %cst_25 = arith.constant 9.99999974E-6 : f32
    %53 = vector.broadcast %cst_25 : f32 to vector<2x1xf32>
    %54 = arith.addf %52, %53 : vector<2x1xf32>
    %55 = math.rsqrt %54 : vector<2x1xf32>
    %56 = vector.broadcast %55 : vector<2x1xf32> to vector<2x32xf32>
    %57 = arith.mulf %47, %56 : vector<2x32xf32>
    %c0_26 = arith.constant 0 : index
    %c0_27 = arith.constant 0 : index
    %58 = vector.load %arg8[%c0_26, %c0_27] : memref<1x128xf32, #tpu.memory_space<vmem>>, vector<1x128xf32>
    %c0_28 = arith.constant 0 : index
    %c0_29 = arith.constant 0 : index
    %59 = vector.load %arg6[%c0_28, %c0_29] : memref<32x128xf32, #tpu.memory_space<vmem>>, vector<32x128xf32>
    %cst_30 = arith.constant dense<0.000000e+00> : vector<2x128xf32>
    %60 = tpu.matmul %57, %59, %cst_30 {dimension_numbers = #tpu.dot_dimension_numbers<[1], [0], [0], [1], [0, 0, 1, 1], [], []>} : vector<2x32xf32>, vector<32x128xf32>, vector<2x128xf32> -> vector<2x128xf32>
    %61 = vector.broadcast %58 : vector<1x128xf32> to vector<2x128xf32>
    %62 = arith.addf %61, %60 : vector<2x128xf32>
    %c0_31 = arith.constant 0 : index
    %c0_32 = arith.constant 0 : index
    %63 = vector.load %arg14[%c0_31, %c0_32] : memref<2x32xf32, #tpu.memory_space<vmem>>, vector<2x32xf32>
    %c0_33 = arith.constant 0 : index
    %c0_34 = arith.constant 0 : index
    %64 = vector.load %arg7[%c0_33, %c0_34] : memref<32x128xf32, #tpu.memory_space<vmem>>, vector<32x128xf32>
    %cst_35 = arith.constant dense<0.000000e+00> : vector<2x128xf32>
    %65 = tpu.matmul %63, %64, %cst_35 {dimension_numbers = #tpu.dot_dimension_numbers<[1], [0], [0], [1], [0, 0, 1, 1], [], []>} : vector<2x32xf32>, vector<32x128xf32>, vector<2x128xf32> -> vector<2x128xf32>
    %66 = arith.addf %62, %65 : vector<2x128xf32>
    %67 = vector.extract_strided_slice %66 {offsets = [0, 0], sizes = [2, 32], strides = [1, 1]} : vector<2x128xf32> to vector<2x32xf32>
    %68 = arith.negf %67 : vector<2x32xf32>
    %69 = math.exp %68 : vector<2x32xf32>
    %cst_36 = arith.constant 1.000000e+00 : f32
    %70 = vector.broadcast %cst_36 : f32 to vector<2x32xf32>
    %71 = arith.addf %70, %69 : vector<2x32xf32>
    %72 = arith.divf %70, %71 : vector<2x32xf32>
    %73 = vector.extract_strided_slice %66 {offsets = [0, 32], sizes = [2, 32], strides = [1, 1]} : vector<2x128xf32> to vector<2x32xf32>
    %74 = arith.negf %73 : vector<2x32xf32>
    %75 = math.exp %74 : vector<2x32xf32>
    %cst_37 = arith.constant 1.000000e+00 : f32
    %76 = vector.broadcast %cst_37 : f32 to vector<2x32xf32>
    %77 = arith.addf %76, %75 : vector<2x32xf32>
    %78 = arith.divf %76, %77 : vector<2x32xf32>
    %79 = vector.extract_strided_slice %66 {offsets = [0, 64], sizes = [2, 32], strides = [1, 1]} : vector<2x128xf32> to vector<2x32xf32>
    %80 = math.tanh %79 : vector<2x32xf32>
    %81 = vector.extract_strided_slice %66 {offsets = [0, 96], sizes = [2, 32], strides = [1, 1]} : vector<2x128xf32> to vector<2x32xf32>
    %82 = arith.negf %81 : vector<2x32xf32>
    %83 = math.exp %82 : vector<2x32xf32>
    %cst_38 = arith.constant 1.000000e+00 : f32
    %84 = vector.broadcast %cst_38 : f32 to vector<2x32xf32>
    %85 = arith.addf %84, %83 : vector<2x32xf32>
    %86 = arith.divf %84, %85 : vector<2x32xf32>
    %c0_39 = arith.constant 0 : index
    %c0_40 = arith.constant 0 : index
    %87 = vector.load %arg15[%c0_39, %c0_40] : memref<2x32xf32, #tpu.memory_space<vmem>>, vector<2x32xf32>
    %88 = arith.mulf %78, %87 : vector<2x32xf32>
    %89 = arith.mulf %72, %80 : vector<2x32xf32>
    %90 = arith.addf %88, %89 : vector<2x32xf32>
    %91 = math.tanh %90 : vector<2x32xf32>
    %92 = arith.mulf %86, %91 : vector<2x32xf32>
    %c0_41 = arith.constant 0 : index
    %c0_42 = arith.constant 0 : index
    %93 = vector.load %arg15[%c0_41, %c0_42] : memref<2x32xf32, #tpu.memory_space<vmem>>, vector<2x32xf32>
    tpu.vector_store %arg15[%c0_41, %c0_42], %90 {strides = array<i32>} : memref<2x32xf32, #tpu.memory_space<vmem>>, vector<2x32xf32>,
    %c0_43 = arith.constant 0 : index
    %c0_44 = arith.constant 0 : index
    %94 = vector.load %arg14[%c0_43, %c0_44] : memref<2x32xf32, #tpu.memory_space<vmem>>, vector<2x32xf32>
    tpu.vector_store %arg14[%c0_43, %c0_44], %92 {strides = array<i32>} : memref<2x32xf32, #tpu.memory_space<vmem>>, vector<2x32xf32>,
    %cst_45 = arith.constant dense<0.000000e+00> : vector<2xf32>
    %95 = vector.multi_reduction <add>, %92, %cst_45 [1] : vector<2x32xf32> to vector<2xf32>
    %96 = vector.shape_cast %95 : vector<2xf32> to vector<2x1xf32>
    %cst_46 = arith.constant 3.200000e+01 : f32
    %97 = vector.broadcast %cst_46 : f32 to vector<2x1xf32>
    %98 = arith.divf %96, %97 : vector<2x1xf32>
    %99 = vector.broadcast %98 : vector<2x1xf32> to vector<2x32xf32>
    %100 = arith.subf %92, %99 : vector<2x32xf32>
    %101 = arith.mulf %100, %100 : vector<2x32xf32>
    %cst_47 = arith.constant dense<0.000000e+00> : vector<2xf32>
    %102 = vector.multi_reduction <add>, %101, %cst_47 [1] : vector<2x32xf32> to vector<2xf32>
    %103 = vector.shape_cast %102 : vector<2xf32> to vector<2x1xf32>
    %cst_48 = arith.constant 3.200000e+01 : f32
    %104 = vector.broadcast %cst_48 : f32 to vector<2x1xf32>
    %105 = arith.divf %103, %104 : vector<2x1xf32>
    %cst_49 = arith.constant 9.99999974E-6 : f32
    %106 = vector.broadcast %cst_49 : f32 to vector<2x1xf32>
    %107 = arith.addf %105, %106 : vector<2x1xf32>
    %108 = math.rsqrt %107 : vector<2x1xf32>
    %109 = vector.broadcast %108 : vector<2x1xf32> to vector<2x32xf32>
    %110 = arith.mulf %100, %109 : vector<2x32xf32>
    %c0_50 = arith.constant 0 : index
    %c0_51 = arith.constant 0 : index
    %111 = vector.load %arg9[%c0_50, %c0_51] : memref<1x32xf32, #tpu.memory_space<vmem>>, vector<1x32xf32>
    %112 = vector.broadcast %111 : vector<1x32xf32> to vector<2x32xf32>
    %113 = arith.mulf %112, %110 : vector<2x32xf32>
    %c0_52 = arith.constant 0 : index
    %c0_53 = arith.constant 0 : index
    %114 = vector.load %arg10[%c0_52, %c0_53] : memref<1x32xf32, #tpu.memory_space<vmem>>, vector<1x32xf32>
    %115 = vector.broadcast %114 : vector<1x32xf32> to vector<2x32xf32>
    %116 = arith.addf %113, %115 : vector<2x32xf32>
    %c0_54 = arith.constant 0 : index
    %c0_55 = arith.constant 0 : index
    %c0_56 = arith.constant 0 : index
    %117 = vector.load %arg11[%c0_54, %c0_55, %c0_56] : memref<1x2x32xf32, #tpu.memory_space<vmem>>, vector<1x2x32xf32>
    %118 = vector.shape_cast %117 : vector<1x2x32xf32> to vector<2x32xf32>
    %119 = vector.shape_cast %116 : vector<2x32xf32> to vector<1x2x32xf32>
    tpu.vector_store %arg11[%c0_54, %c0_55, %c0_56], %119 {strides = array<i32>} : memref<1x2x32xf32, #tpu.memory_space<vmem>>, vector<1x2x32xf32>,
    return
  }
  func.func @transform_0(%arg0: i32, %arg1: i32) -> (i32, i32, i32) {
    %c0_i32 = arith.constant 0 : i32
    %c0_i32_0 = arith.constant 0 : i32
    return %arg1, %arg0, %c0_i32 : i32, i32, i32
  }
  func.func @transform_1(%arg0: i32, %arg1: i32) -> (i32, i32) {
    %c0_i32 = arith.constant 0 : i32
    %c0_i32_0 = arith.constant 0 : i32
    %c0_i32_1 = arith.constant 0 : i32
    return %c0_i32, %c0_i32_0 : i32, i32
  }
  func.func @transform_2(%arg0: i32, %arg1: i32) -> (i32, i32) {
    %c0_i32 = arith.constant 0 : i32
    %c0_i32_0 = arith.constant 0 : i32
    %c0_i32_1 = arith.constant 0 : i32
    return %c0_i32, %c0_i32_0 : i32, i32
  }
  func.func @transform_3(%arg0: i32, %arg1: i32) -> (i32, i32) {
    %c0_i32 = arith.constant 0 : i32
    %c0_i32_0 = arith.constant 0 : i32
    %c0_i32_1 = arith.constant 0 : i32
    return %c0_i32, %c0_i32_0 : i32, i32
  }
  func.func @transform_4(%arg0: i32, %arg1: i32) -> (i32, i32) {
    %c0_i32 = arith.constant 0 : i32
    %c0_i32_0 = arith.constant 0 : i32
    %c0_i32_1 = arith.constant 0 : i32
    return %c0_i32, %c0_i32_0 : i32, i32
  }
  func.func @transform_5(%arg0: i32, %arg1: i32) -> (i32, i32) {
    %c0_i32 = arith.constant 0 : i32
    %c0_i32_0 = arith.constant 0 : i32
    %c0_i32_1 = arith.constant 0 : i32
    return %c0_i32, %c0_i32_0 : i32, i32
  }
  func.func @transform_6(%arg0: i32, %arg1: i32) -> (i32, i32) {
    %c0_i32 = arith.constant 0 : i32
    %c0_i32_0 = arith.constant 0 : i32
    %c0_i32_1 = arith.constant 0 : i32
    return %c0_i32, %c0_i32_0 : i32, i32
  }
  func.func @transform_7(%arg0: i32, %arg1: i32) -> (i32, i32) {
    %c0_i32 = arith.constant 0 : i32
    %c0_i32_0 = arith.constant 0 : i32
    %c0_i32_1 = arith.constant 0 : i32
    return %c0_i32, %c0_i32_0 : i32, i32
  }
  func.func @transform_8(%arg0: i32, %arg1: i32) -> (i32, i32) {
    %c0_i32 = arith.constant 0 : i32
    %c0_i32_0 = arith.constant 0 : i32
    %c0_i32_1 = arith.constant 0 : i32
    return %c0_i32, %c0_i32_0 : i32, i32
  }
  func.func @transform_9(%arg0: i32, %arg1: i32) -> (i32, i32, i32) {
    %c0_i32 = arith.constant 0 : i32
    %c0_i32_0 = arith.constant 0 : i32
    return %arg1, %arg0, %c0_i32 : i32, i32, i32
  }
}

</mosaic_0001>

<bundles_post_ra>
// kernel: tpu_custom_call.1
= control target key start
LH: loop header
LB: loop body
LE: loop exit
PB: predicated region body
PF: predicated region fallthrough
CT: control target
= control target key end

     0   :  { %s1961_s0 = inlined_call_operand.hbm [shape: f32[8,2,32], index: 0, kind: input, shape index: {}]   ;;  %s1962_s1 = inlined_call_operand.hbm [shape: f32[32,128], index: 1, kind: input, shape index: {}]   ;;  %s1963_s2 = inlined_call_operand.hbm [shape: f32[32,128], index: 2, kind: input, shape index: {}]   ;;  %s1964_s3 = inlined_call_operand.vmem [shape: f32[1,128], index: 3, kind: input, shape index: {}]   ;;  %s1965_s4 = inlined_call_operand.hbm [shape: f32[32,128], index: 4, kind: input, shape index: {}]   ;;  %s1966_s5 = inlined_call_operand.hbm [shape: f32[32,128], index: 5, kind: input, shape index: {}]   ;;  %s1967_s6 = inlined_call_operand.vmem [shape: f32[1,128], index: 6, kind: input, shape index: {}]   ;;  %s1968_s7 = inlined_call_operand.vmem [shape: f32[1,32], index: 7, kind: input, shape index: {}]   ;;  %s1969_s8 = inlined_call_operand.vmem [shape: f32[1,32], index: 8, kind: input, shape index: {}]   ;;  %s1970_s9 = inlined_call_operand.hbm [shape: f32[8,2,32], index: 9, kind: output, shape index: {}]  }
   0x1   :  { %1977 = sst [smem:[#allocation20_spill]] %s1961_s0 }
   0x2   :  { %1978 = sst [smem:[#allocation21_spill]] %s1962_s1 }
   0x3   :  { %1979 = sst [smem:[#allocation22_spill]] %s1968_s7 }
   0x4   :  { %1980 = sst [smem:[#allocation23_spill]] %s1969_s8 }
   0x5   :  { %1981 = sst [smem:[#allocation24_spill]] %s1970_s9 }
   0x6   :  { %14 = vsyncpa [#allocation7], 0 }
   0x7   :  { %16 = vsyncpa [#allocation7 + $0x1], 0 }
   0x8   :  { %17 = vsyncpa [#allocation10], 0 }
   0x9   :  { %18 = vsyncpa [#allocation13], 0 }
   0xa   :  { %19 = vsyncpa [#allocation8], 0 }
   0xb   :  { %21 = vsyncpa [#allocation8 + $0x1], 0  ;;  %s1589_s30 = smov 0   ;;  %s1591_s10 = smov 0  }
   0xc   :  { %s1593_s11 = smov 0   ;;  %s1595_s12 = smov 0  }
   0xd   :  { %s1597_s13 = smov 0   ;;  %s1599_s14 = smov 0  }
   0xe LB: > { %s1971_s15 = sadd.s32 4294967295, %s1522_s14   ;;  %p1034_p0 = scmp.ge.s32.totalorder %s1522_s14, 1  ;;  %s1522_s14 = sphi %s1599_s14, %s27_s14   ;;  %s1518_s13 = sphi %s1597_s13, %s2006_s13   ;;  %s1514_s12 = sphi %s1595_s12, %s2005_s12   ;;  %s1510_s11 = sphi %s1593_s11, %s2004_s11   ;;  %s1506_s10 = sphi %s1591_s10, %s2003_s10   ;;  %s1502_s30 = sphi %s1589_s30, %s2002_s30  }
   0xf   : > { %p1623_p1 = scmp.eq.s32.totalorder %s1971_s15, 0  ;;  %p268_p2 = scmp.lt.s32.totalorder %s1522_s14, 9 }
  0x10   : > { %s1524_s18 = smov [#allocation9]   ;;  %s1525_s21 = smov [#allocation12]  }
  0x11   : > { %s1982_s16 = scalar_select %p1623_p1, 1, 0 }
  0x12   : > { %p1628_p3 = pnand %p1034_p0, %p268_p2  ;;  %s280_s19 = sshll.u32 %s1524_s18, 4  ;;  %s1632_s19 = int_to_ptr.vmem [resolvable:$true] %s280_s19 }
  0x13   : > { %s309_s22 = sshll.u32 %s1525_s21, 4  ;;  %s1526_s23 = smov [#allocation11]   ;;  %s1642_s22 = int_to_ptr.vmem [resolvable:$true] %s309_s22 }
  0x14   : > { %s1983_s17 = scalar_select %p1628_p3, 1, 0 }
  0x15   : > { %p1178_p4 = pneg %p1628_p3  ;;  %s1644_s24 = sshll.u32 %s1526_s23, 4  ;;  %s294_s24 = int_to_ptr.vmem [resolvable:$true] %s1644_s24 }
  0x16   : > { %s1985_s1 = sld [smem:[#allocation21_spill]] }
  0x17   : > { %p1638_p5 = pnand %p1178_p4, %p1623_p1 }
  0x19   : > { %p1654_p7 = pneg %p1638_p5 }
  0x1c   : > { %s1290_s27 = scalar_lea.hbm %s1985_s1, 512 }
  0x1d   : > { %p1291_p6 = scmp.ne.s32.totalorder %s1985_s1, %s1290_s27  ;;  %p1297_p10 = scmp.lt.u32.totalorder %s1290_s27, %s1985_s1 }
  0x1f   : > { %p1293_p8 = pnand %p1654_p7, %p1291_p6 }
  0x21   : > { %p1294_p9 = pneg %p1293_p8 }
  0x23   : > { %p1299_p11 = pnand %p1297_p10, %p1294_p9 }
  0x25   : > { %1302 = shalt.err (!%p1299_p11)
}
  0x26   : > { %s1303_s25 = scalar_lea.vmem %s1632_s19, 512  ;;  %p1311_p2 = scmp.lt.s32.totalorder %s1632_s19, %s1632_s19 }
  0x27   : > { %p1304_p12 = scmp.ne.s32.totalorder %s1632_s19, %s1303_s25  ;;  %p1312_p4 = scmp.lt.s32.totalorder %s1303_s25, %s1303_s25 }
  0x29   : > { %p1306_p13 = pnand %p1304_p12, %p1654_p7  ;;  %p1313_p6 = por %p1312_p4, %p1311_p2 }
  0x2b   : > { %p1307_p0 = pneg %p1306_p13 }
  0x2d   : > { %p1314_p8 = pnand %p1313_p6, %p1307_p0 }
  0x2f   : > { %1317 = shalt.err (!%p1314_p8)
}
  0x30   : > { %s1527_s26 = smov 128   ;;  %s1528_s27 = smov 8  }
  0x31   : > { %1181 = dma.hbm_to_vmem [thread:$0]  (!%p1638_p5), %s1985_s1, 512, %s1632_s19, [#allocation10], %s1527_s26, %s1527_s26, %s1528_s27  }
  0x32   : > { %s1318_s25 = scalar_lea.hbm %s1965_s4, 512 }
  0x33   : > { %p1319_p9 = scmp.ne.s32.totalorder %s1965_s4, %s1318_s25  ;;  %p1325_p12 = scmp.lt.u32.totalorder %s1318_s25, %s1965_s4 }
  0x35   : > { %p1321_p10 = pnand %p1319_p9, %p1654_p7 }
  0x37   : > { %p1322_p11 = pneg %p1321_p10 }
  0x39   : > { %p1327_p13 = pnand %p1325_p12, %p1322_p11 }
  0x3b   : > { %1330 = shalt.err (!%p1327_p13)
}
  0x3c   : > { %s1331_s19 = scalar_lea.vmem %s1642_s22, 512  ;;  %p1339_p6 = scmp.lt.s32.totalorder %s1642_s22, %s1642_s22 }
  0x3d   : > { %p1332_p0 = scmp.ne.s32.totalorder %s1642_s22, %s1331_s19  ;;  %p1340_p8 = scmp.lt.s32.totalorder %s1331_s19, %s1331_s19 }
  0x3f   : > { %p1334_p2 = pnand %p1332_p0, %p1654_p7  ;;  %p1341_p9 = por %p1340_p8, %p1339_p6 }
  0x41   : > { %p1335_p4 = pneg %p1334_p2 }
  0x43   : > { %p1342_p10 = pnand %p1341_p9, %p1335_p4 }
  0x45   : > { %1345 = shalt.err (!%p1342_p10)
}
  0x46   : > { %1187 = dma.hbm_to_vmem [thread:$0]  (!%p1638_p5), %s1965_s4, 512, %s1642_s22, [#allocation13], %s1527_s26, %s1527_s26, %s1528_s27  }
  0x47   : > { %s1346_s28 = scalar_lea.hbm %s1963_s2, 512 }
  0x48   : > { %p1347_p11 = scmp.ne.s32.totalorder %s1963_s2, %s1346_s28  ;;  %p1353_p0 = scmp.lt.u32.totalorder %s1346_s28, %s1963_s2 }
  0x4a   : > { %p1349_p12 = pnand %p1347_p11, %p1654_p7 }
  0x4c   : > { %p1350_p13 = pneg %p1349_p12 }
  0x4e   : > { %p1355_p2 = pnand %p1353_p0, %p1350_p13 }
  0x50   : > { %1358 = shalt.err (!%p1355_p2)
}
  0x51   : > { %s1359_s19 = scalar_lea.vmem %s294_s24, 512  ;;  %p1367_p9 = scmp.lt.s32.totalorder %s294_s24, %s294_s24 }
  0x52   : > { %p1360_p4 = scmp.ne.s32.totalorder %s294_s24, %s1359_s19  ;;  %p1368_p10 = scmp.lt.s32.totalorder %s1359_s19, %s1359_s19 }
  0x54   : > { %p1362_p6 = pnand %p1360_p4, %p1654_p7  ;;  %p1369_p3 = por %p1368_p10, %p1367_p9 }
  0x56   : > { %p1363_p8 = pneg %p1362_p6 }
  0x58   : > { %p1370_p1 = pnand %p1369_p3, %p1363_p8 }
  0x5a   : > { %1373 = shalt.err (!%p1370_p1)
}
  0x5b   : > { %1184 = dma.hbm_to_vmem [thread:$0]  (!%p1638_p5), %s1963_s2, 512, %s294_s24, [#allocation10], %s1527_s26, %s1527_s26, %s1528_s27  }
  0x5c   : > { %s1529_s8 = smov [#allocation14]   ;;  %s1374_s29 = scalar_lea.hbm %s1966_s5, 512 }
  0x5d   : > { %s322_s9 = sshll.u32 %s1529_s8, 4  ;;  %p1375_p1 = scmp.ne.s32.totalorder %s1966_s5, %s1374_s29  ;;  %s323_s9 = int_to_ptr.vmem [resolvable:$true] %s322_s9 }
  0x5e   : > { %p1381_p12 = scmp.lt.u32.totalorder %s1374_s29, %s1966_s5 }
  0x5f   : > { %p1377_p3 = pnand %p1375_p1, %p1654_p7 }
  0x61   : > { %p1378_p11 = pneg %p1377_p3 }
  0x63   : > { %p1383_p13 = pnand %p1381_p12, %p1378_p11 }
  0x65   : > { %1386 = shalt.err (!%p1383_p13)
}
  0x66   : > { %s1387_s24 = scalar_lea.vmem %s323_s9, 512  ;;  %p1395_p6 = scmp.lt.s32.totalorder %s323_s9, %s323_s9 }
  0x67   : > { %p1388_p0 = scmp.ne.s32.totalorder %s323_s9, %s1387_s24  ;;  %p1396_p8 = scmp.lt.s32.totalorder %s1387_s24, %s1387_s24 }
  0x69   : > { %p1390_p2 = pnand %p1388_p0, %p1654_p7  ;;  %p1397_p9 = por %p1396_p8, %p1395_p6 }
  0x6b   : > { %p1391_p4 = pneg %p1390_p2 }
  0x6d   : > { %p1398_p10 = pnand %p1397_p9, %p1391_p4 }
  0x6f   : > { %1401 = shalt.err (!%p1398_p10)
}
  0x70   : > { %1190 = dma.hbm_to_vmem [thread:$0]  (!%p1638_p5), %s1966_s5, 512, %s323_s9, [#allocation13], %s1527_s26, %s1527_s26, %s1528_s27  }
  0x71   : > { %s1033_s20 = sadd.s32 4294967294, %s1522_s14   ;;  %s36_s18 = sadd.s32 1, %s1518_s13 }
  0x72   : > { %p37_p7 = scmp.ge.s32.totalorder %s36_s18, 8  ;;  %s48_s8 = sadd.s32 1, %s1510_s11 }
  0x73   : > { %p55_p1 = scmp.ne.s32.totalorder %s1510_s11, %s1506_s10  ;;  %p56_p3 = scmp.eq.s32.totalorder %s1522_s14, 0 }
  0x74   : > { %s2008_s18 = smov (%p37_p7, %s36_s18), 0  ;;  %p61_p12 = scmp.ne.s32.totalorder %s1506_s10, %s1502_s30 }
  0x75   : > { %p1755_p11 = por %p56_p3, %p55_p1  ;;  %s43_s26 = ssub.s32 %s1518_s13, %s2008_s18 }
  0x76   : > { %s1988_s27 = sadd.s32 4294967295, %s1522_s14   ;;  %p46_p13 = scmp.eq.s32.totalorder %s43_s26, 0 }
  0x77   : > { %p255_p5 = scmp.eq.s32.totalorder %s1988_s27, 7  ;;  %p1989_p0 = scmp.ne.s32.totalorder %s1982_s16, 0 }
  0x78   : > { %p261_p6 = scmp.eq.s32.totalorder %s1033_s20, 7  ;;  %p1203_p9 = scmp.lt.s32.totalorder %s1522_s14, 8 }
  0x79   : > { %p1767_p2 = por %p1989_p0, %p61_p12  ;;  %p1771_p4 = por %p255_p5, %p55_p1 }
  0x7a   : > { %s1776_s29 = scalar_select %p46_p13, %s1510_s11, %s48_s8  }
  0x7b   : > { %s1991_s28 = scalar_select %p1771_p4, 1, 0 }
  0x7c   : > { %p1778_p8 = por %p261_p6, %p61_p12  ;;  %s345_s23 = sand.u32 1, %s1510_s11  }
  0x7d   : > { %s1041_s25 = sshll.u32 %s1518_s13, 5  ;;  %s1040_s19 = sshll.u32 %s345_s23, 1 }
  0x7e   : > { %s1992_s21 = scalar_select %p1778_p8, 1, 0 }
  0x7f   : > { %s1993_s0 = sld [smem:[#allocation20_spill]]  ;;  %s349_s20 = scalar_lea.vmem [#allocation6], %s1040_s19 }
  0x80   : > { %s357_s8 = sshll.u32 %s349_s20, 4  ;;  %p1792_p10 = pnand %p1203_p9, %p1755_p11  ;;  %s1796_s8 = int_to_ptr.vmem [resolvable:$true] %s357_s8 }
  0x81   : > { %s346_s27 = scalar_lea.sflag [#allocation7], %s345_s23 }
  0x82   : > { %p1404_p1 = pneg %p1792_p10 }
  0x85   : > { %s1788_s7 = scalar_lea.hbm %s1993_s0, %s1041_s25  ;;  %s1407_s15 = scalar_lea.hbm %s1993_s0, 256 }
  0x86   : > { %s1402_s1 = scalar_lea.hbm %s1788_s7, 32  ;;  %p1408_p11 = scmp.lt.u32.totalorder %s1788_s7, %s1993_s0 }
  0x87   : > { %p1403_p7 = scmp.ne.s32.totalorder %s1788_s7, %s1402_s1  ;;  %p1409_p5 = scmp.lt.u32.totalorder %s1407_s15, %s1402_s1 }
  0x88   : > { %p1411_p0 = scmp.lt.u32.totalorder %s1402_s1, %s1788_s7 }
  0x89   : > { %p1405_p3 = pnand %p1404_p1, %p1403_p7  ;;  %p1410_p13 = por %p1409_p5, %p1408_p11 }
  0x8b   : > { %p1406_p12 = pneg %p1405_p3  ;;  %p1412_p6 = por %p1411_p0, %p1410_p13 }
  0x8d   : > { %p1413_p9 = pnand %p1412_p6, %p1406_p12 }
  0x8f   : > { %1416 = shalt.err (!%p1413_p9)
}
  0x90   : > { %s1417_s23 = scalar_lea.vmem %s1796_s8, 32  ;;  %s1530_s20 = smov [#allocation6]  }
  0x91   : > { %p1418_p7 = scmp.ne.s32.totalorder %s1796_s8, %s1417_s23  ;;  %s1422_s25 = sshll.u32 %s1530_s20, 4  ;;  %s1423_s25 = int_to_ptr.vmem [resolvable:$false] %s1422_s25 }
  0x92   : > { %s1424_s19 = scalar_lea.vmem %s1423_s25, 64  ;;  %p1425_p4 = scmp.lt.s32.totalorder %s1796_s8, %s1423_s25 }
  0x93   : > { %p1420_p3 = pnand %p1418_p7, %p1404_p1  ;;  %p1426_p11 = scmp.lt.s32.totalorder %s1424_s19, %s1417_s23 }
  0x95   : > { %p1421_p8 = pneg %p1420_p3  ;;  %p1427_p5 = por %p1426_p11, %p1425_p4 }
  0x97   : > { %p1428_p13 = pnand %p1427_p5, %p1421_p8 }
  0x99   : > { %1431 = shalt.err (!%p1428_p13)
}
  0x9a   : > { %1194 = dma.hbm_to_vmem [thread:$0]  (!%p1792_p10), %s1788_s7, 32, %s1796_s8, %s346_s27  }
  0x9b   : > { %p1995_p12 = scmp.ne.s32.totalorder %s1983_s17, 0 }
  0x9c   : > { %s1826_s1 = sand.u32 (!%p1995_p12), 1, %s1506_s10  }
  0x9d   : > { %366 = sbr.rel (%p1995_p12) target bundleno = 2705 (0xa91), region = 56  ;;  %s1043_s15 = sshll.u32 (!%p1995_p12), %s1826_s1, 1 }
  0x9e   : > { %s369_s24 = scalar_lea.sflag (!%p1995_p12), [#allocation7], %s1826_s1  ;;  %s1830_s22 = scalar_lea.vmem (!%p1995_p12), [#allocation6], %s1043_s15 }
  0xa4   : > { %1485 = dma.done.wait (%p1767_p2), %s369_s24, 32  }
  0xa5   : > { %1487 = vsyncadd (%p1767_p2), %s369_s24, 4294967264  ;;  %p1996_p4 = scmp.ne.s32.totalorder %s1982_s16, 0 }
  0xa7   : > { %1489 = dma.done.wait (%p1996_p4), [#allocation10], 1024  }
  0xa8   : > { %1491 = vsyncadd (%p1996_p4), [#allocation10], 4294966272 }
  0xa9   : > { %1493 = dma.done.wait (%p1996_p4), [#allocation13], 1024  }
  0xaa   : > { %1495 = vsyncadd (%p1996_p4), [#allocation13], 4294966272  ;;  %s1844_s17 = scalar_lea.vmem [#allocation15], %s1043_s15  ;;  %p1049_p8 = scmp.ne.s32.totalorder %s1514_s12, 0 }
  0xab   : > { %vm427_vm0 = vcmask (!%p1049_p8), 254976   ;;  %v1531_v0 = vmov (!%p1049_p8), 0.0  }
  0xac   : > { %426 = sbr.rel (%p1049_p8) target bundleno = 179 (0xb3), region = 80  ;;  %428 = vst.msk [vmem:[#allocation2] sm:$0x3] (!%p1049_p8), %vm427_vm0, %v1531_v0  ;;  %429 = vst.msk [vmem:[#allocation3] sm:$0x3] (!%p1049_p8), %vm427_vm0, %v1531_v0 }
  0xad   : > { %430 = vst.msk [vmem:[#allocation4] sm:$0x3] (!%p1049_p8), %vm427_vm0, %v1531_v0  ;;  %431 = vst.msk [vmem:[#allocation5] sm:$0x3] (!%p1049_p8), %vm427_vm0, %v1531_v0 }
  0xb3 PF: > { %v434_v1 = vld [vmem:[#allocation9] sm:$0xff]  ;;  %v435_v2 = vld [vmem:[#allocation9 + $0x8] sm:$0xff]  ;;  %v436_v3 = vld [vmem:[#allocation9 + $0x10] sm:$0xff]  ;;  %v1532_v4 = vmov 0.0|0.0   ;;  %vm1533_vm1 = vmmov 0   ;;  %v1534_v7 = vmov 0.0  }
  0xb4   : > { %1128 = vmatprep.subr.bf16.mxu0 %v1532_v4  ;;  %v1129_v5 = vpack.c.bf16 %v435_v2, %v434_v1  ;;  %v437_v6 = vld [vmem:[#allocation9 + $0x18] sm:$0xff]  ;;  %1092 = vmatprep.mubr.msk.f32.mxu0 %vm1533_vm1, %v1534_v7  ;;  %v520_v9 = vld [vmem:[#allocation11] sm:$0xff]  ;;  %v521_v10 = vld [vmem:[#allocation11 + $0x8] sm:$0xff]  ;;  %vm438_vm2 = vcmask 261120   ;;  %s1535_s7 = smov 64   ;;  %s1536_s8 = smov 32  }
  0xb5   : > { %1140 = vmatprep.subr.bf16.mxu1 %v1532_v4  ;;  %1114 = vmatprep.mubr.msk.f32.mxu1 %vm1533_vm1, %v1534_v7  ;;  %v1132_v8 = vpack.c.bf16 %v437_v6, %v436_v3  ;;  %v432_v11 = vld [vmem:[%s1830_s22] sm:$0x3]  ;;  %v1135_v12 = vpack.c.bf16 %v521_v10, %v520_v9  ;;  %v522_v13 = vld [vmem:[#allocation11 + $0x10] sm:$0xff]  ;;  %vm631_vm3 = vcmask 254976   ;;  %v657_v44 = vld [vmem:[#allocation12] sm:$0xff]  ;;  %s1537_s23 = smov 96  }
  0xb6   : > { %1130 = vmatpush3.bf16.msra.mxu0 %v1129_v5  ;;  %v523_v14 = vld [vmem:[#allocation11 + $0x18] sm:$0xff]  ;;  %v519_v16 = vld [vmem:[#allocation2] sm:$0x3]  ;;  %v605_v22 = vld [vmem:[#allocation3] sm:$0x3]  ;;  %s1997_s19 = sld [smem:[#allocation22_spill]] }
  0xb7   : > { %1131 = vmatprep.subr.bf16.mxu0 %v1532_v4  ;;  %v1138_v15 = vpack.c.bf16 %v523_v14, %v522_v13  ;;  %v1051_v17 = vld [vmem:[%s1964_s3] ss:$0 sm:$0xff]  ;;  %v658_v45 = vld [vmem:[#allocation12 + $0x8] sm:$0xff]  ;;  %v660_v48 = vld [vmem:[#allocation12 + $0x18] sm:$0xff]  ;;  %s1998_s22 = sld [smem:[#allocation23_spill]]  ;;  %s1061_s16 = sshll.u32 %s1514_s12, 5 }
  0xb8   : > { %v659_v46 = vld [vmem:[#allocation12 + $0x10] sm:$0xff]  ;;  %v1141_v47 = vpack.c.bf16 %v658_v45, %v657_v44  ;;  %v829_v55 = vld [vmem:[#allocation5] sm:$0x3]  ;;  %v744_v56 = vld [vmem:[#allocation14] sm:$0xff]  ;;  %s914_s9 = sshll.u32 %s1844_s17, 4  ;;  %s1999_s27 = sld [smem:[#allocation24_spill]]  ;;  %s1912_s9 = int_to_ptr.vmem [resolvable:$true] %s914_s9 }
  0xb9   : > { %v1144_v49 = vpack.c.bf16 %v660_v48, %v659_v46  ;;  %v745_v57 = vld [vmem:[#allocation14 + $0x8] sm:$0xff]  ;;  %v746_v59 = vld [vmem:[#allocation14 + $0x10] sm:$0xff]  ;;  %v747_v60 = vld [vmem:[#allocation14 + $0x18] sm:$0xff]  ;;  %s1432_s12 = scalar_lea.vmem %s1912_s9, 32  ;;  %p2000_p10 = scmp.ne.s32.totalorder %s1991_s28, 0 }
  0xba   : > { %1133 = vmatpush3.bf16.msra.mxu0 %v1132_v8  ;;  %1142 = vmatpush3.bf16.msra.mxu1 %v1141_v47  ;;  %v1147_v58 = vpack.c.bf16 %v745_v57, %v744_v56  ;;  %v1150_v62 = vpack.c.bf16 %v747_v60, %v746_v59  ;;  %v743_v63 = vld [vmem:[#allocation4] sm:$0x3]  ;;  %v1055_v0 = vld [vmem:[%s1967_s6] ss:$0 sm:$0xff]  ;;  %p1433_p2 = scmp.ne.s32.totalorder %s1912_s9, %s1432_s12 }
  0xbb   : > { %1134 = vmatprep.subr.bf16.mxu0 %v1532_v4  ;;  %1143 = vmatprep.subr.bf16.mxu1 %v1532_v4 }
  0xbc   : > { %p1434_p1 = pnand %p1433_p2, %p2000_p10 }
  0xbd   : > { %1093 = vmatmul.mubr.msk.f32.vlgmr.msra.gmra.mrb[0].mxu0 %vm438_vm2, %v432_v11 }
  0xbe   : > { %1136 = vmatpush3.bf16.msra.mxu0 %v1135_v12  ;;  %1103 = vmatprep.mubr.msk.f32.mxu0 %vm1533_vm1, %v1534_v7  ;;  %s1910_s0 = scalar_lea.hbm %s1999_s27, %s1061_s16  ;;  %p1435_p0 = pneg %p1434_p1 }
  0xbf   : > { %1137 = vmatprep.subr.bf16.mxu0 %v1532_v4  ;;  %1145 = vmatpush3.bf16.msra.mxu1 %v1144_v49 }
  0xc0   : > { %1146 = vmatprep.subr.bf16.mxu1 %v1532_v4 }
  0xc2   : > { %1139 = vmatpush3.bf16.msra.mxu0 %v1138_v15 }
  0xc5   : > { %1104 = vmatmul.mubr.msk.f32.vlgmr.msra.gmra.mrb[0].mxu0 %vm438_vm2, %v519_v16 }
 0x198   : > { %v593_v18 = vpop.f32.mrb[0].mxu0 }
 0x199   : > { %v1152_v19 = vadd.f32 %v1051_v17, %v593_v18  ;;  %v1105_v20 = vpop.f32.mrb[1].mxu0 }
 0x19b   : > { %1270 = vtanh.f32 %v1152_v19  ;;  %v1053_v23 = vmul.f32 -1.442695, %v1152_v19 }
 0x19d   : > { %1272 = vpow2.f32 %v1053_v23 }
 0x1a5   : > { %v1271_v21 = vpop.eup %1270 }
 0x1a6   : > { %612 = vrot.lane.b32.xlu0 %v1271_v21, %s1535_s7 }
 0x1a7   : > { %v1273_v24 = vpop.eup %1272 }
 0x1a8   : > { %v601_v25 = vadd.f32 1.0, %v1273_v24 }
 0x1aa   : > { %607 = vrot.lane.b32.xlu0 %v605_v22, %s1536_s8  ;;  %1274 = vrcp.f32 %v601_v25 }
 0x1b4   : > { %v1275_v26 = vpop.eup %1274 }
 0x218   : > { %v613_v27 = vpop.permute.xlu0 %612 }
 0x219   : > { %v615_v28 = vmul.f32 %v1275_v26, %v613_v27 }
 0x21b   : > { %617 = vrot.lane.b32.xlu1 %v615_v28, %s1536_s8 }
 0x21c   : > { %v608_v29 = vpop.permute.xlu0 %607 }
 0x21d   : > { %v610_v30 = vmul.f32 %v1275_v26, %v608_v29 }
 0x28d   : > { %v618_v31 = vpop.permute.xlu1 %617 }
 0x28e   : > { %v1867_v32 = vadd.f32 %v618_v31, %v610_v30 }
 0x290   : > { %1276 = vtanh.f32 %v1867_v32 }
 0x29a   : > { %v1277_v33 = vpop.eup %1276 }
 0x29b   : > { %623 = vrot.lane.b32.xlu1 %v1277_v33, %s1535_s7  ;;  %v1058_v33 = vld [vmem:[%s1997_s19] ss:$0 sm:$0xff] }
 0x30d   : > { %v624_v34 = vpop.permute.xlu1 %623 }
 0x30e   : > { %v626_v35 = vmul.f32 %v1275_v26, %v624_v34 }
 0x310   : > { %634 = vrot.lane.b32.xlu0 %v626_v35, %s1536_s8 }
 0x382   : > { %v635_v36 = vpop.permute.xlu0 %634 }
 0x383   : > { %637 = vst.msk [vmem:[#allocation2] sm:$0x3] %vm631_vm3, %v635_v36  ;;  %v638_v37 = vsel %vm631_vm3, %v635_v36, 0.0 }
 0x384   : > { %639 = vadd.xlane.f32.xlu1 %v638_v37 }
 0x411   : > { %v640_v38 = vpop.xlane.xlu1 %639 }
 0x412   : > { %v642_v39 = vmul.f32 0.03125, %v640_v38 }
 0x414   : > { %v643_v40 = vsub.f32 %v626_v35, %v642_v39 }
 0x416   : > { %v644_v41 = vmul.f32 %v643_v40, %v643_v40 }
 0x418   : > { %646 = vrot.lane.b32.xlu0 %v644_v41, %s1536_s8 }
 0x48a   : > { %v647_v42 = vpop.permute.xlu0 %646 }
 0x48b   : > { %v649_v43 = vsel %vm631_vm3, %v647_v42, 0.0 }
 0x48c   : > { %650 = vadd.xlane.f32.xlu0 %v649_v43 }
 0x519   : > { %v651_v50 = vpop.xlane.xlu0 %650 }
 0x51a   : > { %v652_v51 = vmul.f32 0.03125, %v651_v50 }
 0x51c   : > { %v653_v52 = vadd.f32 1e-05, %v652_v51 }
 0x51e   : > { %1278 = vrsqrt.f32 %v653_v52 }
 0x528   : > { %v1279_v53 = vpop.eup %1278 }
 0x529   : > { %v655_v54 = vmul.f32 %v1279_v53, %v643_v40 }
 0x52b   : > { %662 = vrot.lane.b32.xlu1 %v655_v54, %s1536_s8 }
 0x52f   : > { %831 = vrot.lane.b32.xlu1 %v829_v55, %s1536_s8 }
 0x59d   : > { %v663_v61 = vpop.permute.xlu1 %662 }
 0x59e   : > { %1115 = vmatmul.mubr.msk.f32.vlgmr.msra.gmra.mrb[0].mxu1 %vm438_vm2, %v663_v61 }
 0x59f   : > { %1148 = vmatpush3.bf16.msra.mxu1 %v1147_v58  ;;  %1125 = vmatprep.mubr.msk.f32.mxu1 %vm1533_vm1, %v1534_v7 }
 0x5a0   : > { %1149 = vmatprep.subr.bf16.mxu1 %v1532_v4 }
 0x5a1   : > { %v832_v11 = vpop.permute.xlu1 %831 }
 0x5a3   : > { %1151 = vmatpush3.bf16.msra.mxu1 %v1150_v62 }
 0x5a6   : > { %1126 = vmatmul.mubr.msk.f32.vlgmr.msra.gmra.mrb[0].mxu1 %vm438_vm2, %v743_v63 }
 0x679   : > { %v817_v1 = vpop.f32.mrb[0].mxu1 }
 0x67a   : > { %v1153_v2 = vadd.f32 %v1055_v0, %v817_v1  ;;  %v1127_v3 = vpop.f32.mrb[1].mxu1 }
 0x67c   : > { %1280 = vtanh.f32 %v1153_v2  ;;  %v1057_v6 = vmul.f32 -1.442695, %v1153_v2 }
 0x67e   : > { %1282 = vpow2.f32 %v1057_v6 }
 0x686   : > { %v1281_v5 = vpop.eup %1280 }
 0x687   : > { %836 = vrot.lane.b32.xlu0 %v1281_v5, %s1535_s7 }
 0x688   : > { %v1283_v7 = vpop.eup %1282 }
 0x689   : > { %v825_v8 = vadd.f32 1.0, %v1283_v7 }
 0x68b   : > { %1284 = vrcp.f32 %v825_v8 }
 0x695   : > { %v1285_v4 = vpop.eup %1284 }
 0x696   : > { %v834_v12 = vmul.f32 %v1285_v4, %v832_v11 }
 0x6f9   : > { %v837_v9 = vpop.permute.xlu0 %836 }
 0x6fa   : > { %v839_v10 = vmul.f32 %v1285_v4, %v837_v9 }
 0x6fc   : > { %841 = vrot.lane.b32.xlu1 %v839_v10, %s1536_s8 }
 0x76e   : > { %v842_v13 = vpop.permute.xlu1 %841 }
 0x76f   : > { %v844_v14 = vadd.f32 %v842_v13, %v834_v12 }
 0x771   : > { %1286 = vtanh.f32 %v844_v14 }
 0x77b   : > { %v1287_v15 = vpop.eup %1286 }
 0x77c   : > { %847 = vrot.lane.b32.xlu0 %v1287_v15, %s1535_s7 }
 0x7ee   : > { %v848_v16 = vpop.permute.xlu0 %847 }
 0x7ef   : > { %v850_v17 = vmul.f32 %v1285_v4, %v848_v16 }
 0x7f1   : > { %857 = vrot.lane.b32.xlu1 %v850_v17, %s1536_s8 }
 0x863   : > { %v858_v18 = vpop.permute.xlu1 %857 }
 0x864   : > { %860 = vst.msk [vmem:[#allocation4] sm:$0x3] %vm631_vm3, %v858_v18  ;;  %v861_v19 = vsel %vm631_vm3, %v858_v18, 0.0 }
 0x865   : > { %862 = vadd.xlane.f32.xlu0 %v861_v19 }
 0x8f2   : > { %v863_v20 = vpop.xlane.xlu0 %862 }
 0x8f3   : > { %v864_v21 = vmul.f32 0.03125, %v863_v20 }
 0x8f5   : > { %v865_v22 = vsub.f32 %v850_v17, %v864_v21 }
 0x8f7   : > { %v866_v23 = vmul.f32 %v865_v22, %v865_v22 }
 0x8f9   : > { %868 = vrot.lane.b32.xlu1 %v866_v23, %s1536_s8 }
 0x96b   : > { %v869_v24 = vpop.permute.xlu1 %868 }
 0x96c   : > { %v871_v25 = vsel %vm631_vm3, %v869_v24, 0.0 }
 0x96d   : > { %872 = vadd.xlane.f32.xlu1 %v871_v25 }
 0x97e   : > { %628 = vrot.lane.b32.xlu1 %v1867_v32, %s1537_s23  ;;  %v1059_v32 = vld [vmem:[%s1998_s22] ss:$0 sm:$0xff] }
 0x9fa   : > { %v873_v26 = vpop.xlane.xlu1 %872 }
 0x9fb   : > { %v874_v27 = vmul.f32 0.03125, %v873_v26 }
 0x9fd   : > { %v875_v28 = vadd.f32 1e-05, %v874_v27 }
 0x9fe   : > { %v629_v29 = vpop.permute.xlu1 %628 }
 0x9ff   : > { %1288 = vrsqrt.f32 %v875_v28  ;;  %632 = vst.msk [vmem:[#allocation3] sm:$0x3] %vm631_vm3, %v629_v29 }
 0xa09   : > { %v1289_v30 = vpop.eup %1288 }
 0xa0a   : > { %v877_v31 = vmul.f32 %v1289_v30, %v865_v22 }
 0xa0c   : > { %886 = vrot.lane.b32.xlu0 %v877_v31, %s1536_s8  ;;  %s900_s8 = scalar_lea.sflag [#allocation8], %s1826_s1 }
 0xa10   : > { %852 = vrot.lane.b32.xlu0 %v844_v14, %s1537_s23  ;;  %s1538_s23 = smov [#allocation15]  }
 0xa11   : > { %s1436_s20 = sshll.u32 %s1538_s23, 4  ;;  %s1437_s20 = int_to_ptr.vmem [resolvable:$false] %s1436_s20 }
 0xa12   : > { %s1438_s25 = scalar_lea.vmem %s1437_s20, 64  ;;  %p1439_p6 = scmp.lt.s32.totalorder %s1912_s9, %s1437_s20 }
 0xa13   : > { %p1440_p9 = scmp.lt.s32.totalorder %s1438_s25, %s1432_s12 }
 0xa15   : > { %p1441_p7 = por %p1440_p9, %p1439_p6 }
 0xa17   : > { %p1442_p3 = pnand %p1441_p7, %p1435_p0 }
 0xa7e   : > { %v887_v34 = vpop.permute.xlu0 %886 }
 0xa7f   : > { %v889_v35 = vmul.f32 %v1058_v33, %v887_v34 }
 0xa81   : > { %v897_v36 = vadd.f32 %v1059_v32, %v889_v35 }
 0xa82   : > { %v853_v37 = vpop.permute.xlu0 %852 }
 0xa83   : > { %898 = vst.msk [vmem:[%s1844_s17] sm:$0x3] %vm631_vm3, %v897_v36  ;;  %855 = vst.msk [vmem:[#allocation5] sm:$0x3] %vm631_vm3, %v853_v37 }
 0xa84   : > { %1445 = shalt.err (!%p1442_p3)
}
 0xa85   : > { %s1446_s1 = scalar_lea.hbm %s1910_s0, 32  ;;  %s1450_s15 = scalar_lea.hbm %s1999_s27, 256 }
 0xa86   : > { %p1447_p11 = scmp.ne.s32.totalorder %s1910_s0, %s1446_s1  ;;  %p1451_p12 = scmp.lt.u32.totalorder %s1910_s0, %s1999_s27 }
 0xa87   : > { %p1452_p4 = scmp.lt.u32.totalorder %s1450_s15, %s1446_s1  ;;  %p1454_p2 = scmp.lt.u32.totalorder %s1446_s1, %s1910_s0 }
 0xa88   : > { %p1448_p5 = pnand %p1447_p11, %p2000_p10 }
 0xa89   : > { %p1453_p8 = por %p1452_p4, %p1451_p12 }
 0xa8a   : > { %p1449_p13 = pneg %p1448_p5 }
 0xa8b   : > { %p1455_p1 = por %p1454_p2, %p1453_p8 }
 0xa8d   : > { %p1456_p0 = pnand %p1455_p1, %p1449_p13 }
 0xa8f   : > { %1459 = shalt.err (!%p1456_p0)
}
 0xa90   : > { %1176 = dma.vmem_to_hbm [thread:$0]  (%p2000_p10), %s1912_s9, 32, %s1910_s0, %s900_s8  }
 0xa91 PF: > { %p1208_p6 = scmp.ge.s32.totalorder %s1522_s14, 2  ;;  %s926_s16 = sand.u32 1, %s1502_s30  }
 0xa92   : > { %p2001_p9 = scmp.ne.s32.totalorder %s1992_s21, 0  ;;  %s927_s7 = scalar_lea.sflag [#allocation8], %s926_s16 }
 0xa94   : > { %p1196_p7 = pnand %p1208_p6, %p2001_p9 }
 0xa96   : > { %1497 = dma.done.wait (!%p1196_p7), %s927_s7, 32  }
 0xa97   : > { %1499 = vsyncadd (!%p1196_p7), %s927_s7, 4294967264  ;;  %s27_s14 = sadd.s32 1, %s1522_s14   ;;  %s2002_s30 = smov %s1506_s10 }
 0xa98   : > { %p24_p3 = scmp.ge.s32.totalorder %s27_s14, 10   ;;  %s2003_s10 = smov %s1510_s11 }
 0xa99   : > { %s2004_s11 = smov %s1776_s29  ;;  %s2005_s12 = smov %s1518_s13 }
 0xa9a   : > { %s2006_s13 = smov %s2008_s18  ;;  %26 = sbr.rel (!%p24_p3) target bundleno = 14 (0xe), region = 121 }
 0xaa1   :  { %932 = vsyncpa [#allocation7], 1 }
 0xaa2   :  { %934 = vsyncpa [#allocation7 + $0x1], 1 }
 0xaa3   :  { %935 = vsyncpa [#allocation10], 1 }
 0xaa4   :  { %936 = vsyncpa [#allocation13], 1 }
 0xaa5   :  { %937 = vsyncpa [#allocation8], 1 }
 0xaa6   :  { %939 = vsyncpa [#allocation8 + $0x1], 1 }

</bundles_post_ra>
